<compile_context>
chip_gen: v5e
topology: v5e:2x2
jax: 0.10.0
libtpu: 0.0.40
codegen_flags: <defaults>
</compile_context>

<pallas_src>
import functools

import jax
import jax.numpy as jnp
from jax.experimental import pallas as pl
from jax.experimental.pallas import tpu as pltpu


def _round_up(x, m):
    return ((x + m - 1) // m) * m


def _irt2pl_kernel(theta_ref, alpha_ref, beta_ref, out_ref):
    # Blocks arrive transposed: (D, tile_b), batch on the 128-lane axis.
    theta = theta_ref[...]                      # (D, tile_b) f32
    alpha = alpha_ref[...]                      # (D, tile_b) f32
    beta = beta_ref[...]                        # (D, tile_b) f32
    # Reduce over the embedding dim (sublane axis) -> lane-dense (1, tile_b).
    logit = jnp.sum(alpha * (theta - beta), axis=0, keepdims=True)
    # exp goes to the EUP slot; the divide is a few VPU Newton steps, which is
    # free here (memory-bound kernel). Matches torch.sigmoid numerically.
    out_ref[...] = 1.0 / (1.0 + jnp.exp(-logit))


@functools.partial(jax.jit, static_argnames=("max_tile_b",))
def irt2pl_forward(theta_w, alpha_w, beta_w, student_ids, question_ids,
                   max_tile_b=1024):
    """Pallas-backed forward of IRT_2PL.

    theta_w: (num_students, D)   alpha_w, beta_w: (num_questions, D)
    student_ids, question_ids: (B,) int32
    returns: (B, 1) float32
    """
    B = student_ids.shape[0]
    D = theta_w.shape[1]

    # --- batch tiling: lane-axis tiles, multiples of 128, padded batch ------
    max_tile_b = _round_up(max(int(max_tile_b), 128), 128)
    lane_b = _round_up(B, 128)                 # batch rounded to lane width
    tile_b = min(max_tile_b, lane_b)
    # Prefer >= 2 grid steps when possible (v7x has 2 TensorCores; the
    # parallel axis shards across them). No-op for small batches.
    if tile_b == lane_b and tile_b % 256 == 0:
        tile_b //= 2
    B_pad = _round_up(B, tile_b)
    grid = (B_pad // tile_b,)

    pad = B_pad - B
    if pad:
        # Pad ids with 0 (always a valid row); padded outputs are sliced off.
        student_ids = jnp.pad(student_ids, (0, pad))
        question_ids = jnp.pad(question_ids, (0, pad))

    # --- glue: embedding gathers, transposed to (D, B_pad) ------------------
    theta_t = jnp.take(theta_w, student_ids, axis=0).T.astype(jnp.float32)
    alpha_t = jnp.take(alpha_w, question_ids, axis=0).T.astype(jnp.float32)
    beta_t = jnp.take(beta_w, question_ids, axis=0).T.astype(jnp.float32)

    act_spec = pl.BlockSpec((D, tile_b), lambda i: (0, i))
    out_spec = pl.BlockSpec((1, tile_b), lambda i: (0, i))

    cost = pl.CostEstimate(
        flops=3 * B_pad * D,
        transcendentals=B_pad,
        bytes_accessed=3 * B_pad * D * 4 + B_pad * 4,
    )

    out = pl.pallas_call(
        _irt2pl_kernel,
        out_shape=jax.ShapeDtypeStruct((1, B_pad), jnp.float32),
        grid_spec=pltpu.PrefetchScalarGridSpec(
            num_scalar_prefetch=0,
            grid=grid,
            in_specs=[act_spec, act_spec, act_spec],
            out_specs=out_spec,
        ),
        compiler_params=pltpu.CompilerParams(
            dimension_semantics=("parallel",)),
        cost_estimate=cost,
    )(theta_t, alpha_t, beta_t)

    # Lane-dense (1, B_pad) -> PyTorch-shaped (B, 1).
    return out[0, :B].reshape(B, 1)


def _xavier_normal(key, shape):
    # nn.init.xavier_normal_ for a 2-D (fan_out, fan_in) weight.
    fan_out, fan_in = shape
    std = (2.0 / (fan_in + fan_out)) ** 0.5
    return std * jax.random.normal(key, shape, dtype=jnp.float32)


if __name__ == "__main__":
    num_students, num_questions, num_dim = 16, 20, 32
    batch = 8

    root = jax.random.PRNGKey(0)
    k_theta, k_alpha, k_beta, k_sid, k_qid = jax.random.split(root, 5)

    # Deterministic "xavier_normal_" parameter init (shapes from __init__).
    theta_w = _xavier_normal(k_theta, (num_students, num_dim))
    alpha_w = _xavier_normal(k_alpha, (num_questions, num_dim))
    beta_w = _xavier_normal(k_beta, (num_questions, num_dim))

    student_ids = jax.random.randint(k_sid, (batch,), 0, num_students,
                                     dtype=jnp.int32)
    question_ids = jax.random.randint(k_qid, (batch,), 0, num_questions,
                                      dtype=jnp.int32)

    def ref_fn(sid, qid):
        t = theta_w[sid]
        a = alpha_w[qid]
        b = beta_w[qid]
        return jax.nn.sigmoid(jnp.sum(a * (t - b), axis=1, keepdims=True))

    # Small batch (single padded tile).
    pred = irt2pl_forward(theta_w, alpha_w, beta_w, student_ids, question_ids)
    pred = jax.block_until_ready(pred)
    ref = ref_fn(student_ids, question_ids)
    assert pred.shape == (batch, 1), pred.shape
    assert jnp.allclose(pred, ref, atol=1e-6, rtol=1e-6), (pred, ref)

    # Non-multiple batch with a multi-step grid (exercises padding + tiling).
    batch2 = 300
    k_s2, k_q2 = jax.random.split(jax.random.PRNGKey(1), 2)
    sid2 = jax.random.randint(k_s2, (batch2,), 0, num_students, dtype=jnp.int32)
    qid2 = jax.random.randint(k_q2, (batch2,), 0, num_questions, dtype=jnp.int32)
    pred2 = jax.block_until_ready(
        irt2pl_forward(theta_w, alpha_w, beta_w, sid2, qid2, max_tile_b=128))
    ref2 = ref_fn(sid2, qid2)
    assert pred2.shape == (batch2, 1), pred2.shape
    assert jnp.allclose(pred2, ref2, atol=1e-6, rtol=1e-6)

    print("KERNEL_OK")
</pallas_src>

<mosaic_0001>
module attributes {stable_mosaic.version = 11 : i64} {
  func.func @_irt2pl_kernel(%arg0: i32, %arg1: memref<32x128xf32, #tpu.memory_space<vmem>>, %arg2: memref<32x128xf32, #tpu.memory_space<vmem>>, %arg3: memref<32x128xf32, #tpu.memory_space<vmem>>, %arg4: memref<1x128xf32, #tpu.memory_space<vmem>>) attributes {dimension_semantics = [#tpu.dimension_semantics<parallel>], iteration_bounds = array<i64: 1>, scalar_prefetch = 0 : i64, scratch_operands = 0 : i64, tpu.core_type = #tpu.core_type<tc>, window_params = [{transform_indices = @transform_0, window_bounds = array<i64: 32, 128>}, {transform_indices = @transform_1, window_bounds = array<i64: 32, 128>}, {transform_indices = @transform_2, window_bounds = array<i64: 32, 128>}, {transform_indices = @transform_3, window_bounds = array<i64: 1, 128>}]} {
    %c0 = arith.constant 0 : index
    %c0_0 = arith.constant 0 : index
    %0 = vector.load %arg1[%c0, %c0_0] : memref<32x128xf32, #tpu.memory_space<vmem>>, vector<32x128xf32>
    %c0_1 = arith.constant 0 : index
    %c0_2 = arith.constant 0 : index
    %1 = vector.load %arg2[%c0_1, %c0_2] : memref<32x128xf32, #tpu.memory_space<vmem>>, vector<32x128xf32>
    %c0_3 = arith.constant 0 : index
    %c0_4 = arith.constant 0 : index
    %2 = vector.load %arg3[%c0_3, %c0_4] : memref<32x128xf32, #tpu.memory_space<vmem>>, vector<32x128xf32>
    %3 = arith.subf %0, %2 : vector<32x128xf32>
    %4 = arith.mulf %1, %3 : vector<32x128xf32>
    %cst = arith.constant dense<0.000000e+00> : vector<128xf32>
    %5 = vector.multi_reduction <add>, %4, %cst [0] : vector<32x128xf32> to vector<128xf32>
    %6 = vector.shape_cast %5 : vector<128xf32> to vector<1x128xf32>
    %cst_5 = arith.constant 0.000000e+00 : f32
    %7 = vector.broadcast %cst_5 : f32 to vector<1x128xf32>
    %8 = arith.subf %7, %6 : vector<1x128xf32>
    %9 = math.exp %8 : vector<1x128xf32>
    %cst_6 = arith.constant 1.000000e+00 : f32
    %10 = vector.broadcast %cst_6 : f32 to vector<1x128xf32>
    %11 = arith.addf %10, %9 : vector<1x128xf32>
    %cst_7 = arith.constant 1.000000e+00 : f32
    %12 = vector.broadcast %cst_7 : f32 to vector<1x128xf32>
    %13 = arith.divf %12, %11 : vector<1x128xf32>
    %c0_8 = arith.constant 0 : index
    %c0_9 = arith.constant 0 : index
    %14 = vector.load %arg4[%c0_8, %c0_9] : memref<1x128xf32, #tpu.memory_space<vmem>>, vector<1x128xf32>
    tpu.vector_store %arg4[%c0_8, %c0_9], %13 {strides = array<i32>} : memref<1x128xf32, #tpu.memory_space<vmem>>, vector<1x128xf32>,
    return
  }
  func.func @transform_0(%arg0: i32) -> (i32, i32) {
    %c0_i32 = arith.constant 0 : i32
    %c0_i32_0 = arith.constant 0 : i32
    return %c0_i32, %arg0 : i32, i32
  }
  func.func @transform_1(%arg0: i32) -> (i32, i32) {
    %c0_i32 = arith.constant 0 : i32
    %c0_i32_0 = arith.constant 0 : i32
    return %c0_i32, %arg0 : i32, i32
  }
  func.func @transform_2(%arg0: i32) -> (i32, i32) {
    %c0_i32 = arith.constant 0 : i32
    %c0_i32_0 = arith.constant 0 : i32
    return %c0_i32, %arg0 : i32, i32
  }
  func.func @transform_3(%arg0: i32) -> (i32, i32) {
    %c0_i32 = arith.constant 0 : i32
    %c0_i32_0 = arith.constant 0 : i32
    return %c0_i32, %arg0 : i32, i32
  }
}

</mosaic_0001>

<bundles_post_ra>
// kernel: irt2pl_forward.1
= control target key start
LH: loop header
LB: loop body
LE: loop exit
PB: predicated region body
PF: predicated region fallthrough
CT: control target
= control target key end

     0   :  { %s130_s0 = inlined_call_operand.vmem [shape: f32[32,128], index: 0, kind: input, shape index: {}]   ;;  %s131_s1 = inlined_call_operand.vmem [shape: f32[32,128], index: 1, kind: input, shape index: {}]   ;;  %s132_s2 = inlined_call_operand.vmem [shape: f32[32,128], index: 2, kind: input, shape index: {}]   ;;  %s133_s3 = inlined_call_operand.vmem [shape: f32[1,128], index: 3, kind: output, shape index: {}]  }
   0x1   :  { %v14_v0 = vld [vmem:[%s130_s0] sm:$0xff]  ;;  %v15_v1 = vld [vmem:[%s130_s0 + $0x8] sm:$0xff]  ;;  %v16_v2 = vld [vmem:[%s130_s0 + $0x10] sm:$0xff] }
   0x2   :  { %v17_v3 = vld [vmem:[%s130_s0 + $0x18] sm:$0xff]  ;;  %v18_v4 = vld [vmem:[%s131_s1] sm:$0xff]  ;;  %v19_v5 = vld [vmem:[%s131_s1 + $0x8] sm:$0xff] }
   0x3   :  { %v20_v6 = vld [vmem:[%s131_s1 + $0x10] sm:$0xff]  ;;  %v22_v7 = vld [vmem:[%s132_s2] sm:$0xff]  ;;  %v23_v8 = vld [vmem:[%s132_s2 + $0x8] sm:$0xff] }
   0x4   :  { %v24_v9 = vld [vmem:[%s132_s2 + $0x10] sm:$0xff]  ;;  %v25_v10 = vld [vmem:[%s132_s2 + $0x18] sm:$0xff]  ;;  %v26_v11 = vsub.f32 %v14_v0, %v22_v7  ;;  %v27_v12 = vsub.f32 %v15_v1, %v23_v8 }
   0x5   :  { %v28_v13 = vsub.f32 %v16_v2, %v24_v9  ;;  %v29_v14 = vsub.f32 %v17_v3, %v25_v10  ;;  %v21_v15 = vld [vmem:[%s131_s1 + $0x18] sm:$0xff] }
   0x6   :  { %v30_v16 = vmul.f32 %v26_v11, %v18_v4  ;;  %v31_v17 = vmul.f32 %v27_v12, %v19_v5 }
   0x7   :  { %v32_v18 = vmul.f32 %v28_v13, %v20_v6  ;;  %v33_v19 = vmul.f32 %v29_v14, %v21_v15 }
   0x8   :  { %v34_v20 = vadd.f32 %v31_v17, %v30_v16 }
   0xa   :  { %v35_v21 = vadd.f32 %v34_v20, %v32_v18 }
   0xc   :  { %v36_v22 = vadd.f32 %v35_v21, %v33_v19 }
   0xe   :  { %v37_v23 = vrot.slane %v36_v22, 4 }
  0x10   :  { %v38_v24 = vadd.f32 %v37_v23, %v36_v22 }
  0x12   :  { %v39_v25 = vrot.slane %v38_v24, 2 }
  0x14   :  { %v40_v26 = vadd.f32 %v39_v25, %v38_v24 }
  0x16   :  { %v41_v27 = vrot.slane %v40_v26, 1 }
  0x18   :  { %v42_v28 = vadd.f32 %v41_v27, %v40_v26 }
  0x1a   :  { %v43_v29 = vsub.f32 0.0, %v42_v28 }
  0x1c   :  { %v44_v30 = vmul.f32 1.442695, %v43_v29 }
  0x1e   :  { %67 = vpow2.f32 %v44_v30 }
  0x24   :  { %v68_v31 = vpop.eup %67 }
  0x25   :  { %v46_v32 = vadd.f32 1.0, %v68_v31 }
  0x27   :  { %69 = vrcp.f32 %v46_v32  ;;  %v58_v35 = vand.u32 2147483648, %v46_v32  ;;  %vm52_vm0 = vweird.f32 %v46_v32  ;;  %v56_v37 = vand.u32 2147483647, %v46_v32 }
  0x29   :  { %v59_v39 = vor.u32 1.1754944e-38, %v58_v35  ;;  %vm57_vm3 = vcmp.eq.f32.partialorder %v56_v37, 8.507059e+37 }
  0x2d   :  { %v70_v33 = vpop.eup %69 }
  0x2e   :  { %v48_v34 = vmul.f32 %v70_v33, %v46_v32  ;;  %vm53_vm1 = vweird.f32 %v70_v33 }
  0x2f   :  { %vm54_vm2 = vmor %vm52_vm0, %vm53_vm1 }
  0x30   :  { %v49_v36 = vsub.f32 1.0, %v48_v34 }
  0x32   :  { %v50_v38 = vmul.f32 %v70_v33, %v49_v36 }
  0x34   :  { %v51_v40 = vadd.f32 %v70_v33, %v50_v38 }
  0x36   :  { %v55_v41 = vsel %vm54_vm2, %v70_v33, %v51_v40 }
  0x37   :  { %v60_v42 = vsel %vm57_vm3, %v59_v39, %v55_v41 }
  0x38   :  { %62 = vst [vmem:[%s133_s3] sm:$0x1] %v60_v42 }

</bundles_post_ra>
